<compile_context>
chip_gen: v6e
topology: v6e:2x2x1
jax: 0.10.0
libtpu: 0.0.40
codegen_flags: <defaults>
</compile_context>

<pallas_src>
import jax
import jax.numpy as jnp
from jax.experimental import pallas as pl
from jax.experimental.pallas import tpu as pltpu

EPS = 1e-5
NEG_SLOPE = 0.1


def class_block_kernel(x_ref, w1_ref, b1_ref, w2_ref, b2_ref, o_ref):
    # x_ref:  (TM, D_IN)   bf16
    # w1_ref: (D_IN, D_BOT) bf16   (BN folded in)
    # b1_ref: (1, D_BOT)   f32     (BN folded in)
    # w2_ref: (D_BOT, D_CLS) bf16
    # b2_ref: (1, D_CLS)   f32
    # o_ref:  (TM, D_CLS)  f32
    h = jnp.dot(x_ref[...], w1_ref[...], preferred_element_type=jnp.float32)
    h = h + b1_ref[...]
    h = jnp.where(h > 0, h, NEG_SLOPE * h)              # LeakyReLU(0.1), f32
    out = jnp.dot(h.astype(jnp.bfloat16), w2_ref[...],
                  preferred_element_type=jnp.float32) + b2_ref[...]
    o_ref[...] = out.astype(o_ref.dtype)


def class_block(x, kernel_params, *, block_m=512):
    """x: [N, D_IN] (any float dtype).  Returns [N, D_CLS] float32."""
    w1, b1, w2, b2 = kernel_params
    n, d_in = x.shape
    d_bot = w1.shape[1]
    d_cls = w2.shape[1]

    x = x.astype(jnp.bfloat16)

    # Pad batch to a multiple of the row tile (sublane-aligned, >= 8).
    n_pad = ((n + 7) // 8) * 8
    tm = min(block_m, n_pad)
    n_pad = ((n_pad + tm - 1) // tm) * tm
    if n_pad != n:
        x = jnp.pad(x, ((0, n_pad - n), (0, 0)))

    grid = (n_pad // tm,)

    out = pl.pallas_call(
        class_block_kernel,
        out_shape=jax.ShapeDtypeStruct((n_pad, d_cls), jnp.float32),
        grid=grid,
        in_specs=[
            pl.BlockSpec((tm, d_in), lambda i: (i, 0)),     # x: streamed per tile
            pl.BlockSpec((d_in, d_bot), lambda i: (0, 0)),  # weights resident
            pl.BlockSpec((1, d_bot), lambda i: (0, 0)),
            pl.BlockSpec((d_bot, d_cls), lambda i: (0, 0)),
            pl.BlockSpec((1, d_cls), lambda i: (0, 0)),
        ],
        out_specs=pl.BlockSpec((tm, d_cls), lambda i: (i, 0)),
        compiler_params=pltpu.CompilerParams(
            dimension_semantics=("parallel",),   # shard batch tiles across TCs (v7x)
            vmem_limit_bytes=48 << 20,           # headroom for v7x's 64 MiB VMEM
        ),
    )(x, w1, b1, w2, b2)

    return out[:n] if n_pad != n else out


def make_raw_params(key, d_in, d_bot, d_cls):
    """Deterministic params mirroring ClassBlock.__init__ (PyTorch inits)."""
    k = jax.random.split(key, 8)

    # Linear(d_in, d_bot): kaiming_normal fan_out (a=0) -> std = sqrt(2/d_bot)
    w1_pt = jnp.sqrt(2.0 / d_bot) * jax.random.normal(k[0], (d_bot, d_in), jnp.float32)
    b1_lin = jnp.zeros((d_bot,), jnp.float32)

    # BatchNorm1d(d_bot): weight ~ N(1, 0.02), bias = 0; running stats (eval mode)
    gamma = 1.0 + 0.02 * jax.random.normal(k[1], (d_bot,), jnp.float32)
    beta = jnp.zeros((d_bot,), jnp.float32)
    run_mean = 0.01 * jax.random.normal(k[2], (d_bot,), jnp.float32)
    run_var = 1.0 + jnp.abs(0.1 * jax.random.normal(k[3], (d_bot,), jnp.float32))

    # classifier Linear(d_bot, d_cls): normal(std=0.001), bias = 0
    w2_pt = 0.001 * jax.random.normal(k[4], (d_cls, d_bot), jnp.float32)
    b2 = jnp.zeros((d_cls,), jnp.float32)

    return w1_pt, b1_lin, gamma, beta, run_mean, run_var, w2_pt, b2


def fold_params(raw):
    """Fold eval-mode BatchNorm into Linear1; transpose weights; cast to bf16."""
    w1_pt, b1_lin, gamma, beta, run_mean, run_var, w2_pt, b2 = raw
    a = gamma * jax.lax.rsqrt(run_var + EPS)                    # (d_bot,)
    w1 = (w1_pt.T * a[None, :]).astype(jnp.bfloat16)            # (d_in, d_bot)
    b1 = ((b1_lin - run_mean) * a + beta).reshape(1, -1)        # (1, d_bot) f32
    w2 = w2_pt.T.astype(jnp.bfloat16)                           # (d_bot, d_cls)
    b2 = b2.reshape(1, -1)                                      # (1, d_cls) f32
    return w1, b1, w2, b2


def reference(x, kernel_params):
    """Precision-matched pure-JAX reference (bf16 operands, f32 accumulate)."""
    w1, b1, w2, b2 = kernel_params
    xb = x.astype(jnp.bfloat16).astype(jnp.float32)
    h = xb @ w1.astype(jnp.float32) + b1
    h = jnp.where(h > 0, h, NEG_SLOPE * h)
    h = h.astype(jnp.bfloat16).astype(jnp.float32)
    return h @ w2.astype(jnp.float32) + b2


if __name__ == "__main__":
    key = jax.random.PRNGKey(0)
    kx, kp = jax.random.split(key)

    N, D_IN, D_BOT, D_CLS = 16, 256, 512, 128   # num_bottleneck=512 (module default)

    x = jax.random.normal(kx, (N, D_IN), jnp.float32)
    raw = make_raw_params(kp, D_IN, D_BOT, D_CLS)
    params = fold_params(raw)

    out = jax.jit(class_block)(x, params)
    out = jax.block_until_ready(out)

    ref = reference(x, params)
    assert out.shape == (N, D_CLS), out.shape
    assert jnp.allclose(out, ref, atol=1e-3, rtol=1e-2), (
        float(jnp.max(jnp.abs(out - ref)))
    )
    # TODO(synk): droprate>0 (Dropout) and return_f=True branches not implemented
    # (module defaults are droprate=0.0, return_f=False).
    print("KERNEL_OK")
</pallas_src>

<mosaic_0001>
module attributes {stable_mosaic.version = 11 : i64} {
  func.func @class_block_kernel(%arg0: i32, %arg1: memref<16x256xbf16, #tpu.memory_space<vmem>>, %arg2: memref<256x512xbf16, #tpu.memory_space<vmem>>, %arg3: memref<1x512xf32, #tpu.memory_space<vmem>>, %arg4: memref<512x128xbf16, #tpu.memory_space<vmem>>, %arg5: memref<1x128xf32, #tpu.memory_space<vmem>>, %arg6: memref<16x128xf32, #tpu.memory_space<vmem>>) attributes {dimension_semantics = [#tpu.dimension_semantics<parallel>], iteration_bounds = array<i64: 1>, scalar_prefetch = 0 : i64, scratch_operands = 0 : i64, tpu.core_type = #tpu.core_type<tc>, window_params = [{transform_indices = @transform_0, window_bounds = array<i64: 16, 256>}, {pipeline_mode = #tpu.pipeline_mode<synchronous>, transform_indices = @transform_1, window_bounds = array<i64: 256, 512>}, {pipeline_mode = #tpu.pipeline_mode<synchronous>, transform_indices = @transform_2, window_bounds = array<i64: 1, 512>}, {pipeline_mode = #tpu.pipeline_mode<synchronous>, transform_indices = @transform_3, window_bounds = array<i64: 512, 128>}, {pipeline_mode = #tpu.pipeline_mode<synchronous>, transform_indices = @transform_4, window_bounds = array<i64: 1, 128>}, {transform_indices = @transform_5, window_bounds = array<i64: 16, 128>}]} {
    %c0 = arith.constant 0 : index
    %c0_0 = arith.constant 0 : index
    %0 = vector.load %arg1[%c0, %c0_0] : memref<16x256xbf16, #tpu.memory_space<vmem>>, vector<16x256xbf16>
    %c0_1 = arith.constant 0 : index
    %c0_2 = arith.constant 0 : index
    %1 = vector.load %arg2[%c0_1, %c0_2] : memref<256x512xbf16, #tpu.memory_space<vmem>>, vector<256x512xbf16>
    %cst = arith.constant dense<0.000000e+00> : vector<16x512xf32>
    %2 = tpu.matmul %0, %1, %cst {dimension_numbers = #tpu.dot_dimension_numbers<[1], [0], [0], [1], [0, 0, 1, 1], [], []>} : vector<16x256xbf16>, vector<256x512xbf16>, vector<16x512xf32> -> vector<16x512xf32>
    %c0_3 = arith.constant 0 : index
    %c0_4 = arith.constant 0 : index
    %3 = vector.load %arg3[%c0_3, %c0_4] : memref<1x512xf32, #tpu.memory_space<vmem>>, vector<1x512xf32>
    %4 = vector.broadcast %3 : vector<1x512xf32> to vector<16x512xf32>
    %5 = arith.addf %2, %4 : vector<16x512xf32>
    %cst_5 = arith.constant 0.000000e+00 : f32
    %6 = vector.broadcast %cst_5 : f32 to vector<16x512xf32>
    %7 = arith.cmpf ogt, %5, %6 : vector<16x512xf32>
    %cst_6 = arith.constant 1.000000e-01 : f32
    %8 = vector.broadcast %cst_6 : f32 to vector<16x512xf32>
    %9 = arith.mulf %8, %5 : vector<16x512xf32>
    %10 = arith.select %7, %5, %9 : vector<16x512xi1>, vector<16x512xf32>
    %11 = arith.truncf %10 : vector<16x512xf32> to vector<16x512xbf16>
    %c0_7 = arith.constant 0 : index
    %c0_8 = arith.constant 0 : index
    %12 = vector.load %arg4[%c0_7, %c0_8] : memref<512x128xbf16, #tpu.memory_space<vmem>>, vector<512x128xbf16>
    %cst_9 = arith.constant dense<0.000000e+00> : vector<16x128xf32>
    %13 = tpu.matmul %11, %12, %cst_9 {dimension_numbers = #tpu.dot_dimension_numbers<[1], [0], [0], [1], [0, 0, 1, 1], [], []>} : vector<16x512xbf16>, vector<512x128xbf16>, vector<16x128xf32> -> vector<16x128xf32>
    %c0_10 = arith.constant 0 : index
    %c0_11 = arith.constant 0 : index
    %14 = vector.load %arg5[%c0_10, %c0_11] : memref<1x128xf32, #tpu.memory_space<vmem>>, vector<1x128xf32>
    %15 = vector.broadcast %14 : vector<1x128xf32> to vector<16x128xf32>
    %16 = arith.addf %13, %15 : vector<16x128xf32>
    %c0_12 = arith.constant 0 : index
    %c0_13 = arith.constant 0 : index
    %17 = vector.load %arg6[%c0_12, %c0_13] : memref<16x128xf32, #tpu.memory_space<vmem>>, vector<16x128xf32>
    tpu.vector_store %arg6[%c0_12, %c0_13], %16 {strides = array<i32>} : memref<16x128xf32, #tpu.memory_space<vmem>>, vector<16x128xf32>,
    return
  }
  func.func @transform_0(%arg0: i32) -> (i32, i32) {
    %c0_i32 = arith.constant 0 : i32
    %c0_i32_0 = arith.constant 0 : i32
    return %arg0, %c0_i32 : i32, i32
  }
  func.func @transform_1(%arg0: i32) -> (i32, i32) {
    %c0_i32 = arith.constant 0 : i32
    %c0_i32_0 = arith.constant 0 : i32
    %c0_i32_1 = arith.constant 0 : i32
    return %c0_i32, %c0_i32_0 : i32, i32
  }
  func.func @transform_2(%arg0: i32) -> (i32, i32) {
    %c0_i32 = arith.constant 0 : i32
    %c0_i32_0 = arith.constant 0 : i32
    %c0_i32_1 = arith.constant 0 : i32
    return %c0_i32, %c0_i32_0 : i32, i32
  }
  func.func @transform_3(%arg0: i32) -> (i32, i32) {
    %c0_i32 = arith.constant 0 : i32
    %c0_i32_0 = arith.constant 0 : i32
    %c0_i32_1 = arith.constant 0 : i32
    return %c0_i32, %c0_i32_0 : i32, i32
  }
  func.func @transform_4(%arg0: i32) -> (i32, i32) {
    %c0_i32 = arith.constant 0 : i32
    %c0_i32_0 = arith.constant 0 : i32
    %c0_i32_1 = arith.constant 0 : i32
    return %c0_i32, %c0_i32_0 : i32, i32
  }
  func.func @transform_5(%arg0: i32) -> (i32, i32) {
    %c0_i32 = arith.constant 0 : i32
    %c0_i32_0 = arith.constant 0 : i32
    return %arg0, %c0_i32 : i32, i32
  }
}

</mosaic_0001>

<bundles_post_ra>
// kernel: class_block.1
= control target key start
LH: loop header
LB: loop body
LE: loop exit
PB: predicated region body
PF: predicated region fallthrough
CT: control target
= control target key end

     0   :  { %10 = vsyncpa [#allocation3], 0  ;;  %s1357_s0 = inlined_call_operand.vmem [shape: bf16[16,256], index: 0, kind: input, shape index: {}]   ;;  %s1358_s1 = inlined_call_operand.hbm [shape: bf16[256,512], index: 1, kind: input, shape index: {}]   ;;  %s1359_s2 = inlined_call_operand.vmem [shape: f32[1,512], index: 2, kind: input, shape index: {}]   ;;  %s1360_s3 = inlined_call_operand.hbm [shape: bf16[512,128], index: 3, kind: input, shape index: {}]   ;;  %s1361_s4 = inlined_call_operand.vmem [shape: f32[1,128], index: 4, kind: input, shape index: {}]   ;;  %s1362_s5 = inlined_call_operand.hbm [shape: f32[16,128], index: 5, kind: output, shape index: {}]  }
   0x1   :  { %11 = vsyncpa [#allocation6], 0 }
   0x2   :  { %12 = vsyncpa [#allocation4], 0  ;;  %s1296_s18 = smov [#allocation2]  }
   0x3   :  { %s20_s19 = sshll.u32 %s1296_s18, 4  ;;  %s21_s19 = int_to_ptr.vmem [resolvable:$true] %s20_s19 }
   0x4   :  { %s1238_s20 = scalar_lea.vmem %s21_s19, 8192  ;;  %p1243_p1 = scmp.lt.s32.totalorder %s21_s19, %s21_s19 }
   0x5   :  { %p1239_p0 = scmp.ne.s32.totalorder %s21_s19, %s1238_s20  ;;  %p1244_p2 = scmp.lt.s32.totalorder %s1238_s20, %s1238_s20 }
   0x7   :  { %p1245_p3 = por %p1244_p2, %p1243_p1 }
   0x9   :  { %p1246_p4 = pnand %p1245_p3, %p1239_p0 }
   0xb   :  { %1249 = shalt.err (!%p1246_p4)
}
   0xc   :  { %s1297_s21 = smov 256   ;;  %s1298_s22 = smov 16  }
   0xd   :  { %26 = dma.hbm_to_vmem [thread:$0]  %s1358_s1, 8192, %s21_s19, [#allocation3], %s1297_s21, %s1297_s21, %s1298_s22  }
   0xe   :  { %s1299_s25 = smov [#allocation5]  }
   0xf   :  { %s34_s26 = sshll.u32 %s1299_s25, 4  ;;  %s35_s26 = int_to_ptr.vmem [resolvable:$true] %s34_s26 }
  0x10   :  { %s1258_s27 = scalar_lea.vmem %s35_s26, 4096  ;;  %p1263_p6 = scmp.lt.s32.totalorder %s35_s26, %s35_s26 }
  0x11   :  { %p1259_p5 = scmp.ne.s32.totalorder %s35_s26, %s1258_s27  ;;  %p1264_p7 = scmp.lt.s32.totalorder %s1258_s27, %s1258_s27 }
  0x13   :  { %p1265_p8 = por %p1264_p7, %p1263_p6 }
  0x15   :  { %p1266_p9 = pnand %p1265_p8, %p1259_p5 }
  0x17   :  { %1269 = shalt.err (!%p1266_p9)
}
  0x18   :  { %s1300_s28 = smov 64   ;;  %s1301_s29 = smov 4  }
  0x19   :  { %40 = dma.hbm_to_vmem [thread:$0]  %s1360_s3, 4096, %s35_s26, [#allocation6], %s1300_s28, %s1300_s28, %s1301_s29  }
  0x1a   :  { %1290 = dma.done.wait [#allocation3], 8192  }
  0x1b   :  { %1291 = vsyncadd [#allocation3], 4294959104 }
  0x1c   :  { %1292 = dma.done.wait [#allocation6], 4096  }
  0x1d   :  { %1293 = vsyncadd [#allocation6], 4294963200  ;;  %v1099_v0 = vld [vmem:[#allocation2 + $0xe4] ss:$16 sps:$4 sm:$0xff]   ;;  %v1101_v1 = vld [vmem:[#allocation2 + $0xec] ss:$16 sps:$4 sm:$0xff]  }
  0x1e   :  { %468 = vmatprep.subr.bf16.mxu0 %v1099_v0  ;;  %v1103_v2 = vld [vmem:[#allocation2 + $0xe0] ss:$16 sps:$4 sm:$0xff]   ;;  %v1104_v3 = vld [vmem:[#allocation2 + $0xe8] ss:$16 sps:$4 sm:$0xff]   ;;  %511 = vmatprep.subr.bf16.mxu1 %v1101_v1  ;;  %v1105_v4 = vld [vmem:[#allocation2 + $0xc4] ss:$16 sps:$4 sm:$0xff]  }
  0x1f   :  { %469 = vmatpush1.bf16.msra.mxu0 %v1103_v2  ;;  %512 = vmatpush1.bf16.msra.mxu1 %v1104_v3  ;;  %v1107_v5 = vld [vmem:[#allocation2 + $0xcc] ss:$16 sps:$4 sm:$0xff]   ;;  %v1109_v6 = vld [vmem:[#allocation2 + $0xc0] ss:$16 sps:$4 sm:$0xff]   ;;  %v1110_v7 = vld [vmem:[#allocation2 + $0xc8] ss:$16 sps:$4 sm:$0xff]  }
  0x20   :  { %470 = vmatprep.subr.bf16.mxu0 %v1105_v4  ;;  %513 = vmatprep.subr.bf16.mxu1 %v1107_v5  ;;  %v1111_v8 = vld [vmem:[#allocation2 + $0xa4] ss:$16 sps:$4 sm:$0xff]   ;;  %v1113_v9 = vld [vmem:[#allocation2 + $0xac] ss:$16 sps:$4 sm:$0xff]   ;;  %v1115_v10 = vld [vmem:[#allocation2 + $0xa0] ss:$16 sps:$4 sm:$0xff]  }
  0x21   :  { %v1116_v11 = vld [vmem:[#allocation2 + $0xa8] ss:$16 sps:$4 sm:$0xff]   ;;  %v1117_v12 = vld [vmem:[#allocation2 + $0x84] ss:$16 sps:$4 sm:$0xff]   ;;  %v1119_v13 = vld [vmem:[#allocation2 + $0x8c] ss:$16 sps:$4 sm:$0xff]  }
  0x22   :  { %v1121_v14 = vld [vmem:[#allocation2 + $0x80] ss:$16 sps:$4 sm:$0xff]   ;;  %v1122_v15 = vld [vmem:[#allocation2 + $0x88] ss:$16 sps:$4 sm:$0xff]   ;;  %v1123_v16 = vld [vmem:[#allocation2 + $0x64] ss:$16 sps:$4 sm:$0xff]  }
  0x23   :  { %471 = vmatpush1.bf16.msra.mxu0 %v1109_v6  ;;  %514 = vmatpush1.bf16.msra.mxu1 %v1110_v7  ;;  %v1125_v17 = vld [vmem:[#allocation2 + $0x6c] ss:$16 sps:$4 sm:$0xff]   ;;  %v1127_v18 = vld [vmem:[#allocation2 + $0x60] ss:$16 sps:$4 sm:$0xff]   ;;  %v1128_v19 = vld [vmem:[#allocation2 + $0x68] ss:$16 sps:$4 sm:$0xff]  }
  0x24   :  { %472 = vmatprep.subr.bf16.mxu0 %v1111_v8  ;;  %515 = vmatprep.subr.bf16.mxu1 %v1113_v9  ;;  %v1129_v20 = vld [vmem:[#allocation2 + $0x44] ss:$16 sps:$4 sm:$0xff]   ;;  %v1131_v21 = vld [vmem:[#allocation2 + $0x4c] ss:$16 sps:$4 sm:$0xff]   ;;  %v1133_v22 = vld [vmem:[#allocation2 + $0x40] ss:$16 sps:$4 sm:$0xff]  }
  0x25   :  { %v1134_v23 = vld [vmem:[#allocation2 + $0x48] ss:$16 sps:$4 sm:$0xff]   ;;  %v1135_v24 = vld [vmem:[#allocation2 + $0x24] ss:$16 sps:$4 sm:$0xff]   ;;  %v1137_v25 = vld [vmem:[#allocation2 + $0x2c] ss:$16 sps:$4 sm:$0xff]  }
  0x26   :  { %v1139_v26 = vld [vmem:[#allocation2 + $0x20] ss:$16 sps:$4 sm:$0xff]   ;;  %v1140_v27 = vld [vmem:[#allocation2 + $0x28] ss:$16 sps:$4 sm:$0xff]   ;;  %v1141_v28 = vld [vmem:[#allocation2 + $0x4] ss:$16 sps:$4 sm:$0xff]  }
  0x27   :  { %473 = vmatpush1.bf16.msra.mxu0 %v1115_v10  ;;  %516 = vmatpush1.bf16.msra.mxu1 %v1116_v11  ;;  %v1143_v29 = vld [vmem:[#allocation2 + $0xc] ss:$16 sps:$4 sm:$0xff]   ;;  %v1145_v30 = vld [vmem:[#allocation2] ss:$16 sps:$4 sm:$0xff]   ;;  %v1146_v31 = vld [vmem:[#allocation2 + $0x8] ss:$16 sps:$4 sm:$0xff]  }
  0x28   :  { %474 = vmatprep.subr.bf16.mxu0 %v1117_v12  ;;  %517 = vmatprep.subr.bf16.mxu1 %v1119_v13  ;;  %v1147_v32 = vld [vmem:[#allocation2 + $0x1e4] ss:$16 sps:$4 sm:$0xff]   ;;  %v1149_v33 = vld [vmem:[#allocation2 + $0x1ec] ss:$16 sps:$4 sm:$0xff]   ;;  %v1151_v34 = vld [vmem:[#allocation2 + $0x1e0] ss:$16 sps:$4 sm:$0xff]  }
  0x29   :  { %v1152_v35 = vld [vmem:[#allocation2 + $0x1e8] ss:$16 sps:$4 sm:$0xff]   ;;  %v1153_v36 = vld [vmem:[#allocation2 + $0x1c4] ss:$16 sps:$4 sm:$0xff]   ;;  %v1155_v37 = vld [vmem:[#allocation2 + $0x1cc] ss:$16 sps:$4 sm:$0xff]  }
  0x2a   :  { %v1157_v38 = vld [vmem:[#allocation2 + $0x1c0] ss:$16 sps:$4 sm:$0xff]   ;;  %v1158_v39 = vld [vmem:[#allocation2 + $0x1c8] ss:$16 sps:$4 sm:$0xff]   ;;  %v1159_v40 = vld [vmem:[#allocation2 + $0x1a4] ss:$16 sps:$4 sm:$0xff]  }
  0x2b   :  { %475 = vmatpush1.bf16.msra.mxu0 %v1121_v14  ;;  %518 = vmatpush1.bf16.msra.mxu1 %v1122_v15  ;;  %v1161_v41 = vld [vmem:[#allocation2 + $0x1ac] ss:$16 sps:$4 sm:$0xff]   ;;  %v1163_v42 = vld [vmem:[#allocation2 + $0x1a0] ss:$16 sps:$4 sm:$0xff]   ;;  %v1164_v43 = vld [vmem:[#allocation2 + $0x1a8] ss:$16 sps:$4 sm:$0xff]  }
  0x2c   :  { %476 = vmatprep.subr.bf16.mxu0 %v1123_v16  ;;  %519 = vmatprep.subr.bf16.mxu1 %v1125_v17  ;;  %v1165_v44 = vld [vmem:[#allocation2 + $0x184] ss:$16 sps:$4 sm:$0xff]   ;;  %v1167_v45 = vld [vmem:[#allocation2 + $0x18c] ss:$16 sps:$4 sm:$0xff]   ;;  %v1169_v46 = vld [vmem:[#allocation2 + $0x180] ss:$16 sps:$4 sm:$0xff]  }
  0x2d   :  { %v1170_v47 = vld [vmem:[#allocation2 + $0x188] ss:$16 sps:$4 sm:$0xff]   ;;  %v1197_v48 = vld [vmem:[%s1357_s0 + $0x4] ss:$8 sps:$4 sm:$0xff]   ;;  %v1175_v51 = vld [vmem:[#allocation2 + $0x160] ss:$16 sps:$4 sm:$0xff]  }
  0x2e   :  { %v1171_v49 = vld [vmem:[#allocation2 + $0x164] ss:$16 sps:$4 sm:$0xff]   ;;  %v1173_v50 = vld [vmem:[#allocation2 + $0x16c] ss:$16 sps:$4 sm:$0xff]   ;;  %500 = vmatprep.mubr.bf16.mxu0 %v1197_v48  ;;  %543 = vmatprep.mubr.bf16.mxu1 %v1197_v48  ;;  %v1176_v52 = vld [vmem:[#allocation2 + $0x168] ss:$16 sps:$4 sm:$0xff]  }
  0x2f   :  { %477 = vmatpush1.bf16.msra.mxu0 %v1127_v18  ;;  %520 = vmatpush1.bf16.msra.mxu1 %v1128_v19  ;;  %v1177_v53 = vld [vmem:[#allocation2 + $0x144] ss:$16 sps:$4 sm:$0xff]   ;;  %v1179_v54 = vld [vmem:[#allocation2 + $0x14c] ss:$16 sps:$4 sm:$0xff]   ;;  %v1181_v55 = vld [vmem:[#allocation2 + $0x140] ss:$16 sps:$4 sm:$0xff]  }
  0x30   :  { %478 = vmatprep.subr.bf16.mxu0 %v1129_v20  ;;  %521 = vmatprep.subr.bf16.mxu1 %v1131_v21  ;;  %v1182_v56 = vld [vmem:[#allocation2 + $0x148] ss:$16 sps:$4 sm:$0xff]   ;;  %v1183_v57 = vld [vmem:[#allocation2 + $0x124] ss:$16 sps:$4 sm:$0xff]   ;;  %v1185_v58 = vld [vmem:[#allocation2 + $0x12c] ss:$16 sps:$4 sm:$0xff]  }
  0x31   :  { %v1187_v59 = vld [vmem:[#allocation2 + $0x120] ss:$16 sps:$4 sm:$0xff]   ;;  %v1188_v60 = vld [vmem:[#allocation2 + $0x128] ss:$16 sps:$4 sm:$0xff]   ;;  %v1189_v61 = vld [vmem:[#allocation2 + $0x104] ss:$16 sps:$4 sm:$0xff]  }
  0x32   :  { %v1191_v62 = vld [vmem:[#allocation2 + $0x10c] ss:$16 sps:$4 sm:$0xff]   ;;  %v1193_v63 = vld [vmem:[#allocation2 + $0x100] ss:$16 sps:$4 sm:$0xff]   ;;  %v1194_v0 = vld [vmem:[#allocation2 + $0x108] ss:$16 sps:$4 sm:$0xff]  }
  0x33   :  { %479 = vmatpush1.bf16.msra.mxu0 %v1133_v22  ;;  %522 = vmatpush1.bf16.msra.mxu1 %v1134_v23  ;;  %v1198_v1 = vld [vmem:[#allocation5 + $0x78] sm:$0xff]   ;;  %v1195_v2 = vld [vmem:[%s1357_s0] ss:$8 sps:$4 sm:$0xff]   ;;  %v1202_v6 = vld [vmem:[#allocation5 + $0x70] sm:$0xff]   ;;  %s1302_s11 = smov [#allocation7]  }
  0x34   :  { %480 = vmatprep.subr.bf16.mxu0 %v1135_v24  ;;  %523 = vmatprep.subr.bf16.mxu1 %v1137_v25  ;;  %v1199_v3 = vld [vmem:[#allocation5 + $0xf8] sm:$0xff]   ;;  %v1203_v7 = vld [vmem:[#allocation5 + $0xf0] sm:$0xff]   ;;  %v1206_v10 = vld [vmem:[#allocation5 + $0x68] sm:$0xff]   ;;  %s934_s12 = sshll.u32 %s1302_s11, 4  ;;  %s935_s12 = int_to_ptr.vmem [resolvable:$true] %s934_s12 }
  0x35   :  { %v1200_v4 = vld [vmem:[#allocation5 + $0x38] sm:$0xff]   ;;  %v1204_v8 = vld [vmem:[#allocation5 + $0x30] sm:$0xff]   ;;  %v1207_v11 = vld [vmem:[#allocation5 + $0xe8] sm:$0xff]   ;;  %p1275_p11 = scmp.lt.s32.totalorder %s935_s12, %s935_s12 }
  0x36   :  { %v1201_v5 = vld [vmem:[#allocation5 + $0xb8] sm:$0xff]   ;;  %v1205_v9 = vld [vmem:[#allocation5 + $0xb0] sm:$0xff]   ;;  %v1208_v12 = vld [vmem:[#allocation5 + $0x28] sm:$0xff]  }
  0x37   :  { %481 = vmatpush1.bf16.msra.mxu0 %v1139_v26  ;;  %524 = vmatpush1.bf16.msra.mxu1 %v1140_v27  ;;  %v1209_v13 = vld [vmem:[#allocation5 + $0xa8] sm:$0xff]   ;;  %v1210_v14 = vld [vmem:[#allocation5 + $0x60] sm:$0xff]   ;;  %v1214_v18 = vld [vmem:[#allocation5 + $0x58] sm:$0xff]  }
  0x38   :  { %482 = vmatprep.subr.bf16.mxu0 %v1141_v28  ;;  %525 = vmatprep.subr.bf16.mxu1 %v1143_v29  ;;  %v1211_v15 = vld [vmem:[#allocation5 + $0xe0] sm:$0xff]   ;;  %v1215_v19 = vld [vmem:[#allocation5 + $0xd8] sm:$0xff]   ;;  %v1218_v22 = vld [vmem:[#allocation5 + $0x50] sm:$0xff]  }
  0x39   :  { %v1212_v16 = vld [vmem:[#allocation5 + $0x20] sm:$0xff]   ;;  %v1216_v20 = vld [vmem:[#allocation5 + $0x18] sm:$0xff]   ;;  %v1219_v23 = vld [vmem:[#allocation5 + $0xd0] sm:$0xff]  }
  0x3a   :  { %v1213_v17 = vld [vmem:[#allocation5 + $0xa0] sm:$0xff]   ;;  %v1217_v21 = vld [vmem:[#allocation5 + $0x98] sm:$0xff]   ;;  %v1220_v24 = vld [vmem:[#allocation5 + $0x10] sm:$0xff]  }
  0x3b   :  { %483 = vmatpush1.bf16.msra.mxu0 %v1145_v30  ;;  %526 = vmatpush1.bf16.msra.mxu1 %v1146_v31  ;;  %v1221_v25 = vld [vmem:[#allocation5 + $0x90] sm:$0xff]   ;;  %v1222_v26 = vld [vmem:[#allocation5 + $0x48] sm:$0xff]   ;;  %v1226_v30 = vld [vmem:[#allocation5 + $0x40] sm:$0xff]  }
  0x3c   :  { %484 = vmatprep.subr.bf16.mxu0 %v1147_v32  ;;  %527 = vmatprep.subr.bf16.mxu1 %v1149_v33  ;;  %v1223_v27 = vld [vmem:[#allocation5 + $0xc8] sm:$0xff]   ;;  %v1227_v31 = vld [vmem:[#allocation5 + $0xc0] sm:$0xff]  }
  0x3d   :  { %v1224_v28 = vld [vmem:[#allocation5 + $0x8] sm:$0xff]   ;;  %v1228_v32 = vld [vmem:[#allocation5] sm:$0xff]  }
  0x3e   :  { %v1225_v29 = vld [vmem:[#allocation5 + $0x88] sm:$0xff]   ;;  %v1229_v33 = vld [vmem:[#allocation5 + $0x80] sm:$0xff]  }
  0x3f   :  { %485 = vmatpush2.bf16.msra.mxu0 %v1151_v34  ;;  %528 = vmatpush2.bf16.msra.mxu1 %v1152_v35  ;;  %v118_v34 = vlaneseq }
  0x40   :  { %486 = vmatprep.subr.bf16.mxu0 %v1153_v36  ;;  %529 = vmatprep.subr.bf16.mxu1 %v1155_v37  ;;  %v116_v37 = vld [vmem:[%s1359_s2] sm:$0xf] }
  0x41   :  { %v119_v35 = vshrl.u32 %v118_v34, 7 }
  0x43   :  { %487 = vmatpush2.bf16.msra.mxu0 %v1157_v38  ;;  %530 = vmatpush2.bf16.msra.mxu1 %v1158_v39  ;;  %v120_v36 = vsub.s32 0, %v119_v35  ;;  %v124_v38 = vsub.s32 1, %v119_v35  ;;  %v132_v39 = vsub.s32 3, %v119_v35 }
  0x44   :  { %488 = vmatprep.subr.bf16.mxu0 %v1159_v40  ;;  %531 = vmatprep.subr.bf16.mxu1 %v1161_v41  ;;  %v128_v40 = vsub.s32 2, %v119_v35 }
  0x45   :  { %v121_v41 = vrot.slane %v116_v37, %v120_v36 }
  0x47   :  { %489 = vmatpush2.bf16.msra.mxu0 %v1163_v42  ;;  %532 = vmatpush2.bf16.msra.mxu1 %v1164_v43 }
  0x48   :  { %490 = vmatprep.subr.bf16.mxu0 %v1165_v44  ;;  %533 = vmatprep.subr.bf16.mxu1 %v1167_v45  ;;  %v125_v44 = vrot.slane %v116_v37, %v124_v38  ;;  %v133_v45 = vrot.slane %v116_v37, %v132_v39 }
  0x4b   :  { %491 = vmatpush2.bf16.msra.mxu0 %v1169_v46  ;;  %534 = vmatpush2.bf16.msra.mxu1 %v1170_v47  ;;  %v129_v46 = vrot.slane %v116_v37, %v128_v40 }
  0x4c   :  { %492 = vmatprep.subr.bf16.mxu0 %v1171_v49  ;;  %535 = vmatprep.subr.bf16.mxu1 %v1173_v50 }
  0x4f   :  { %493 = vmatpush2.bf16.msra.mxu0 %v1175_v51  ;;  %536 = vmatpush2.bf16.msra.mxu1 %v1176_v52 }
  0x50   :  { %494 = vmatprep.subr.bf16.mxu0 %v1177_v53  ;;  %537 = vmatprep.subr.bf16.mxu1 %v1179_v54 }
  0x53   :  { %495 = vmatpush2.bf16.msra.mxu0 %v1181_v55  ;;  %538 = vmatpush2.bf16.msra.mxu1 %v1182_v56 }
  0x54   :  { %496 = vmatprep.subr.bf16.mxu0 %v1183_v57  ;;  %539 = vmatprep.subr.bf16.mxu1 %v1185_v58 }
  0x57   :  { %497 = vmatpush2.bf16.msra.mxu0 %v1187_v59  ;;  %540 = vmatpush2.bf16.msra.mxu1 %v1188_v60 }
  0x58   :  { %498 = vmatprep.subr.bf16.mxu0 %v1189_v61  ;;  %541 = vmatprep.subr.bf16.mxu1 %v1191_v62 }
  0x5b   :  { %499 = vmatpush2.bf16.msra.mxu0 %v1193_v63  ;;  %542 = vmatpush2.bf16.msra.mxu1 %v1194_v0 }
  0x5c   :  { %1046 = vmatprep.subr.bf16.mxu0 %v1198_v1  ;;  %1068 = vmatprep.subr.bf16.mxu1 %v1199_v3 }
  0x5e   :  { %501 = vmatmul.mubr.bf16.vlgmr.msra.gmra.mxu0 %v1195_v2  ;;  %544 = vmatmul.mubr.bf16.vlgmr.msra.gmra.mxu1 %v1195_v2 }
  0x5f   :  { %1047 = vmatpush3.bf16.msra.mxu0 %v1200_v4  ;;  %1069 = vmatpush3.bf16.msra.mxu1 %v1201_v5 }
  0x60   :  { %1048 = vmatprep.subr.bf16.mxu0 %v1202_v6  ;;  %1070 = vmatprep.subr.bf16.mxu1 %v1203_v7 }
  0x63   :  { %1049 = vmatpush3.bf16.msra.mxu0 %v1204_v8  ;;  %1071 = vmatpush3.bf16.msra.mxu1 %v1205_v9 }
  0x64   :  { %1050 = vmatprep.subr.bf16.mxu0 %v1206_v10  ;;  %1072 = vmatprep.subr.bf16.mxu1 %v1207_v11 }
  0x67   :  { %1051 = vmatpush3.bf16.msra.mxu0 %v1208_v12  ;;  %1073 = vmatpush3.bf16.msra.mxu1 %v1209_v13 }
  0x68   :  { %1052 = vmatprep.subr.bf16.mxu0 %v1210_v14  ;;  %1074 = vmatprep.subr.bf16.mxu1 %v1211_v15 }
  0x6b   :  { %1053 = vmatpush3.bf16.msra.mxu0 %v1212_v16  ;;  %1075 = vmatpush3.bf16.msra.mxu1 %v1213_v17 }
  0x6c   :  { %1054 = vmatprep.subr.bf16.mxu0 %v1214_v18  ;;  %1076 = vmatprep.subr.bf16.mxu1 %v1215_v19  ;;  %v1013_v19 = vld [vmem:[%s1361_s4] ss:$0 sm:$0xff]  ;;  %s1270_s4 = scalar_lea.vmem %s935_s12, 256 }
  0x6d   :  { %p1271_p10 = scmp.ne.s32.totalorder %s935_s12, %s1270_s4  ;;  %p1276_p12 = scmp.lt.s32.totalorder %s1270_s4, %s1270_s4 }
  0x6f   :  { %1055 = vmatpush3.bf16.msra.mxu0 %v1216_v20  ;;  %1077 = vmatpush3.bf16.msra.mxu1 %v1217_v21  ;;  %p1277_p13 = por %p1276_p12, %p1275_p11 }
  0x70   :  { %1056 = vmatprep.subr.bf16.mxu0 %v1218_v22  ;;  %1078 = vmatprep.subr.bf16.mxu1 %v1219_v23 }
  0x71   :  { %p1278_p0 = pnand %p1277_p13, %p1271_p10 }
  0x73   :  { %1057 = vmatpush3.bf16.msra.mxu0 %v1220_v24  ;;  %1079 = vmatpush3.bf16.msra.mxu1 %v1221_v25 }
  0x74   :  { %1058 = vmatprep.subr.bf16.mxu0 %v1222_v26  ;;  %1080 = vmatprep.subr.bf16.mxu1 %v1223_v27 }
  0x77   :  { %1059 = vmatpush3.bf16.msra.mxu0 %v1224_v28  ;;  %1081 = vmatpush3.bf16.msra.mxu1 %v1225_v29 }
  0x78   :  { %1060 = vmatprep.subr.bf16.mxu0 %v1226_v30  ;;  %1082 = vmatprep.subr.bf16.mxu1 %v1227_v31 }
  0x7b   :  { %1061 = vmatpush3.bf16.msra.mxu0 %v1228_v32  ;;  %1083 = vmatpush3.bf16.msra.mxu1 %v1229_v33 }
 0x11e   :  { %v502_v42 = vpop.f32.mrf.mxu0  ;;  %v545_v43 = vpop.f32.mrf.mxu1 }
 0x11f   :  { %v503_v49 = vadd.f32 %v502_v42, %v121_v41  ;;  %v546_v56 = vadd.f32 %v545_v43, %v129_v46 }
 0x120   :  { %v504_v47 = vpop.f32.mrf.mxu0  ;;  %v547_v48 = vpop.f32.mrf.mxu1 }
 0x121   :  { %v505_v50 = vadd.f32 %v504_v47, %v125_v44  ;;  %v548_v53 = vadd.f32 %v547_v48, %v133_v45  ;;  %vm554_vm0 = vcmp.gt.f32.partialorder %v503_v49, 0.0  ;;  %v562_v0 = vmul.f32 0.1, %v503_v49 }
 0x122   :  { %v506_v51 = vpop.f32.mrf.mxu0  ;;  %v549_v52 = vpop.f32.mrf.mxu1  ;;  %v564_v2 = vmul.f32 0.1, %v546_v56  ;;  %vm556_vm6 = vcmp.gt.f32.partialorder %v546_v56, 0.0 }
 0x123   :  { %v507_v54 = vadd.f32 %v506_v51, %v121_v41  ;;  %v550_v55 = vadd.f32 %v549_v52, %v129_v46  ;;  %v563_v59 = vmul.f32 0.1, %v505_v50  ;;  %vm555_vm2 = vcmp.gt.f32.partialorder %v505_v50, 0.0 }
 0x124   :  { %v508_v57 = vpop.f32.mrf.mxu0  ;;  %v551_v58 = vpop.f32.mrf.mxu1  ;;  %v565_v1 = vmul.f32 0.1, %v548_v53  ;;  %vm557_vm4 = vcmp.gt.f32.partialorder %v548_v53, 0.0  ;;  %v570_v9 = vsel %vm554_vm0, %v503_v49, %v562_v0  ;;  %v572_v13 = vsel %vm556_vm6, %v546_v56, %v564_v2 }
 0x125   :  { %v566_v60 = vmul.f32 0.1, %v507_v54  ;;  %vm558_vm1 = vcmp.gt.f32.partialorder %v507_v54, 0.0  ;;  %v568_v61 = vmul.f32 0.1, %v550_v55  ;;  %v509_v62 = vadd.f32 %v508_v57, %v125_v44 }
 0x126   :  { %v552_v63 = vadd.f32 %v551_v58, %v133_v45  ;;  %vm560_vm3 = vcmp.gt.f32.partialorder %v550_v55, 0.0  ;;  %v571_v7 = vsel %vm555_vm2, %v505_v50, %v563_v59  ;;  %v573_v11 = vsel %vm557_vm4, %v548_v53, %v565_v1 }
 0x127   :  { %vm559_vm5 = vcmp.gt.f32.partialorder %v509_v62, 0.0  ;;  %v567_v3 = vmul.f32 0.1, %v509_v62  ;;  %v574_v4 = vsel %vm558_vm1, %v507_v54, %v566_v60  ;;  %v576_v6 = vsel %vm560_vm3, %v550_v55, %v568_v61 }
 0x128   :  { %vm561_vm7 = vcmp.gt.f32.partialorder %v552_v63, 0.0  ;;  %v569_v5 = vmul.f32 0.1, %v552_v63  ;;  %v578_v14 = vpack.c.bf16 %v574_v4, %v570_v9  ;;  %v580_v16 = vpack.c.bf16 %v576_v6, %v572_v13 }
 0x129   :  { %v575_v8 = vsel %vm559_vm5, %v509_v62, %v567_v3 }
 0x12a   :  { %v579_v10 = vpack.c.bf16 %v575_v8, %v571_v7  ;;  %v577_v12 = vsel %vm561_vm7, %v552_v63, %v569_v5 }
 0x12b   :  { %v581_v15 = vpack.c.bf16 %v577_v12, %v573_v11 }
 0x12c   :  { %877 = vmatprep.mubr.bf16.mxu0 %v579_v10 }
 0x12d   :  { %918 = vmatprep.mubr.bf16.mxu1 %v581_v15  ;;  %878 = vmatmul.mubr.bf16.vlgmr.msra.gmra.mxu0 %v578_v14 }
 0x12e   :  { %919 = vmatmul.mubr.bf16.vlgmr.msra.gmra.mxu1 %v580_v16 }
 0x1ed   :  { %v1062_v17 = vpop.f32.mrf.mxu0 }
 0x1ee   :  { %v1084_v18 = vpop.f32.mrf.mxu1 }
 0x1ef   :  { %v1063_v20 = vpop.f32.mrf.mxu0 }
 0x1f0   :  { %v1064_v21 = vadd.f32 %v1063_v20, %v1062_v17  ;;  %v1085_v22 = vpop.f32.mrf.mxu1 }
 0x1f1   :  { %v1065_v23 = vpop.f32.mrf.mxu0  ;;  %v1086_v25 = vadd.f32 %v1085_v22, %v1084_v18 }
 0x1f2   :  { %v880_v24 = vadd.f32 %v1064_v21, %v1013_v19  ;;  %v1087_v26 = vpop.f32.mrf.mxu1 }
 0x1f3   :  { %v1066_v27 = vpop.f32.mrf.mxu0 }
 0x1f4   :  { %v921_v28 = vadd.f32 %v1086_v25, %v880_v24  ;;  %v1067_v29 = vadd.f32 %v1066_v27, %v1065_v23  ;;  %v1088_v30 = vpop.f32.mrf.mxu1 }
 0x1f5   :  { %v1089_v32 = vadd.f32 %v1088_v30, %v1087_v26 }
 0x1f6   :  { %927 = vst [vmem:[#allocation7] sm:$0xff] %v921_v28  ;;  %v883_v31 = vadd.f32 %v1067_v29, %v1013_v19 }
 0x1f8   :  { %v924_v33 = vadd.f32 %v1089_v32, %v883_v31 }
 0x1fa   :  { %928 = vst [vmem:[#allocation7 + $0x8] sm:$0xff] %v924_v33 }
 0x1fb   :  { %1281 = shalt.err (!%p1278_p0)
}
 0x1fc   :  { %s1303_s13 = smov 128   ;;  %s1304_s14 = smov 8  }
 0x1fd   :  { %940 = dma.vmem_to_hbm [thread:$0]  %s935_s12, 256, %s1362_s5, [#allocation4], %s1303_s13, %s1303_s13, %s1304_s14  }
 0x1fe   :  { %1294 = dma.done.wait [#allocation4], 256  }
 0x1ff   :  { %1295 = vsyncadd [#allocation4], 4294967040 }
 0x200   :  { %944 = vsyncpa [#allocation3], 1 }
 0x201   :  { %945 = vsyncpa [#allocation6], 1 }
 0x202   :  { %946 = vsyncpa [#allocation4], 1 }

</bundles_post_ra>
